<compile_context>
chip_gen: v7x
topology: tpu7x:2x2x1
jax: 0.10.0
libtpu: 0.0.40
codegen_flags: <defaults>
</compile_context>

<pallas_src>
import math

import jax
import jax.numpy as jnp
from jax import lax
from jax.experimental import pallas as pl
from jax.experimental.pallas import tpu as pltpu

_VMEM_LIMIT = 32 * 1024 * 1024  # worst kernel needs ~13 MB; leaves headroom on v7x


def _cparams():
    return pltpu.CompilerParams(
        dimension_semantics=("parallel",),
        vmem_limit_bytes=_VMEM_LIMIT,
    )


# ---------------------------------------------------------------------------
# Conv3d (stride 1) with optional symmetric zero padding folded into the kernel.
# Layout: activations are (D, H, C, W) per sample -> W on lanes, C on sublanes.
# ---------------------------------------------------------------------------
def _make_conv_kernel(k, p, D, H, W, Ho, Wo, cin, cout, patch_dtype):
    KK = k * k * cin

    def kernel(*refs):
        x_refs = refs[:k]          # k depth planes, each (1, H, cin, W)
        w_ref = refs[k]            # (k, cout, KK) bf16, indexed by kx
        b_ref = refs[k + 1]        # (cout, 1) f32
        o_ref = refs[k + 2]        # (1, Ho, cout, Wo)
        patch_ref = refs[k + 3]    # VMEM scratch (KK, W + 2p)

        if p > 0:
            # zero once per grid step: the W margins stay zero, data rows are
            # rewritten every output row.
            patch_ref[...] = jnp.zeros_like(patch_ref)
            z = pl.program_id(0)

        # bias broadcast hoisted out of the row loop (broadcast is not CSE'd)
        bias = jnp.broadcast_to(b_ref[...], (cout, Wo)).astype(jnp.float32)

        def row_body(y, carry):
            r = 0
            for kz in range(k):
                for ky in range(k):
                    if p > 0:
                        zin = z - p + kz
                        yin = y - p + ky
                        ok = (zin >= 0) & (zin < D) & (yin >= 0) & (yin < H)
                        yin_c = jnp.maximum(jnp.minimum(yin, H - 1), 0)
                        row = x_refs[kz][0, yin_c, :, :]
                        row = jnp.where(ok, row, jnp.zeros_like(row))
                    else:
                        row = x_refs[kz][0, y + ky, :, :]
                    patch_ref[r:r + cin, p:p + W] = row.astype(patch_dtype)
                    r += cin
            # k accumulating MXU dots on lane-shifted views (no kx copies)
            acc = bias
            for kx in range(k):
                acc = acc + jnp.dot(
                    w_ref[kx],
                    patch_ref[:, kx:kx + Wo].astype(jnp.bfloat16),
                    preferred_element_type=jnp.float32)
            o_ref[0, y, :, :] = acc.astype(o_ref.dtype)
            return carry

        lax.fori_loop(0, Ho, row_body, 0)

    return kernel


def conv3d(x, w, b, pad=0, out_dtype=None):
    """3D conv, stride 1, symmetric zero padding `pad` folded into the kernel.
    x: (D, H, Cin, W);  w: (Cout, Cin, k, k, k);  b: (Cout,)."""
    cout, cin, k = w.shape[0], w.shape[1], w.shape[2]
    D, H, C, W = x.shape
    assert C == cin, (C, cin)
    p = int(pad)
    Do, Ho, Wo = D + 2 * p - k + 1, H + 2 * p - k + 1, W + 2 * p - k + 1
    if out_dtype is None:
        out_dtype = jnp.bfloat16
    KK = k * k * cin
    # bf16 patch scratch when the per-(kz,ky) row stores are sublane aligned
    patch_dtype = jnp.bfloat16 if cin % 16 == 0 else jnp.float32

    # weights arranged as (kx, cout, (kz, ky, cin)) to match the patch row order
    w2 = jnp.transpose(w, (4, 0, 2, 3, 1)).reshape(k, cout, KK).astype(jnp.bfloat16)
    b2 = b.reshape(cout, 1).astype(jnp.float32)
    x = x.astype(jnp.bfloat16)

    def plane_map(c):
        if p == 0:
            return lambda z: (z + c, 0, 0, 0)
        return lambda z: (jnp.maximum(jnp.minimum(z - p + c, D - 1), 0), 0, 0, 0)

    in_specs = [pl.BlockSpec((1, H, cin, W), plane_map(c)) for c in range(k)]
    in_specs.append(pl.BlockSpec((k, cout, KK), lambda z: (0, 0, 0)))
    in_specs.append(pl.BlockSpec((cout, 1), lambda z: (0, 0)))

    out = pl.pallas_call(
        _make_conv_kernel(k, p, D, H, W, Ho, Wo, cin, cout, patch_dtype),
        out_shape=jax.ShapeDtypeStruct((Do, Ho, cout, Wo), out_dtype),
        grid=(Do,),
        in_specs=in_specs,
        out_specs=pl.BlockSpec((1, Ho, cout, Wo), lambda z: (z, 0, 0, 0)),
        scratch_shapes=[pltpu.VMEM((KK, W + 2 * p), patch_dtype)],
        compiler_params=_cparams(),
    )(*([x] * k), w2, b2)
    return out


def conv_transpose3d(x, w, b, out_dtype=None):
    """ConvTranspose3d (stride 1, padding 0).  w uses the PyTorch layout
    (Cin, Cout, k, k, k).  Implemented as a 'full' conv with flipped /
    channel-swapped weights; the zero padding is folded into the conv kernel."""
    k = w.shape[2]
    w_conv = jnp.transpose(jnp.flip(w, axis=(2, 3, 4)), (1, 0, 2, 3, 4))
    return conv3d(x, w_conv, b, pad=k - 1, out_dtype=out_dtype)


# ---------------------------------------------------------------------------
# Fused MaxPool3d with indices (values + within-window argmax), MaxUnpool3d.
# ---------------------------------------------------------------------------
def _make_pool_kernel(k, Ho, C, W, Wo):
    Wd = W - k + 1  # width of the shift-max arrays; needed positions xo*k < Wd

    def kernel(x_ref, ov_ref, oi_ref, vw_ref, iw_ref):
        def row_body(yo, carry):
            best = None
            bidx = None
            for dz in range(k):
                for dy in range(k):
                    v = x_ref[dz, yo * k + dy, :, :].astype(jnp.float32)
                    code = float(dz * k + dy)
                    if best is None:
                        best = v
                        bidx = jnp.full((C, W), code, jnp.float32)
                    else:
                        upd = v > best
                        best = jnp.where(upd, v, best)
                        bidx = jnp.where(upd, code, bidx)
            # W-direction window max via static lane-shifted slices
            wbest = best[:, 0:Wd]
            widx = bidx[:, 0:Wd] * float(k)
            for dx in range(1, k):
                v = best[:, dx:dx + Wd]
                c = bidx[:, dx:dx + Wd] * float(k) + float(dx)
                upd = v > wbest
                wbest = jnp.where(upd, v, wbest)
                widx = jnp.where(upd, c, widx)
            vw_ref[yo] = wbest.astype(vw_ref.dtype)
            iw_ref[yo] = widx.astype(iw_ref.dtype)
            return carry

        lax.fori_loop(0, Ho, row_body, 0)

        # Stride-k lane decimation with one MXU matmul per output.  The
        # selection matrix has exactly one 1.0 per column, so the products and
        # f32 accumulation are exact for the (finite) bf16 values / small
        # integer codes involved.
        rows = lax.broadcasted_iota(jnp.int32, (Wd, Wo), 0)
        cols = lax.broadcasted_iota(jnp.int32, (Wd, Wo), 1)
        sel = (rows == cols * k).astype(jnp.bfloat16)
        vflat = vw_ref[...].reshape(Ho * C, Wd)
        iflat = iw_ref[...].reshape(Ho * C, Wd)
        vals = jnp.dot(vflat, sel, preferred_element_type=jnp.float32)
        idxf = jnp.dot(iflat, sel, preferred_element_type=jnp.float32)
        ov_ref[0] = vals.reshape(Ho, C, Wo).astype(ov_ref.dtype)
        oi_ref[0] = (idxf.reshape(Ho, C, Wo) + 0.5).astype(jnp.int32)

    return kernel


def maxpool3d_with_idx(x, k):
    """MaxPool3d(kernel=stride=k, floor mode) on (D, H, C, W).  Returns pooled
    values (x.dtype) and the flat within-window argmax (dz*k*k + dy*k + dx)."""
    D, H, C, W = x.shape
    Do, Ho, Wo = D // k, H // k, W // k
    x = x[:Do * k, :Ho * k, :, :Wo * k]  # floor-mode crop (no-op when divisible)
    Wc = Wo * k
    Wd = Wc - k + 1

    in_spec = pl.BlockSpec((k, Ho * k, C, Wc), lambda z: (z, 0, 0, 0))
    out_spec = pl.BlockSpec((1, Ho, C, Wo), lambda z: (z, 0, 0, 0))
    vals, idx = pl.pallas_call(
        _make_pool_kernel(k, Ho, C, Wc, Wo),
        out_shape=(jax.ShapeDtypeStruct((Do, Ho, C, Wo), x.dtype),
                   jax.ShapeDtypeStruct((Do, Ho, C, Wo), jnp.int32)),
        grid=(Do,),
        in_specs=[in_spec],
        out_specs=(out_spec, out_spec),
        scratch_shapes=[pltpu.VMEM((Ho, C, Wd), jnp.bfloat16),
                        pltpu.VMEM((Ho, C, Wd), jnp.bfloat16)],
        compiler_params=_cparams(),
    )(x)
    return vals, idx


def _pool_windows(x, k):
    D, H, C, W = x.shape
    Do, Ho, Wo = D // k, H // k, W // k
    x = x[:Do * k, :Ho * k, :, :Wo * k]
    xr = x.reshape(Do, k, Ho, k, C, Wo, k)
    return jnp.transpose(xr, (0, 2, 4, 5, 1, 3, 6)).reshape(Do, Ho, C, Wo, k ** 3)


def maxpool3d_jnp(x, k):
    """Plain-jnp pool (same index convention); used only for the tiny pool4."""
    xw = _pool_windows(x, k)
    return jnp.max(xw, axis=-1), jnp.argmax(xw, axis=-1).astype(jnp.int32)


def maxunpool3d(vals, idx, k, out_spatial):
    """MaxUnpool3d with output_size: scatter each pooled value to its recorded
    within-window position, zeros elsewhere.  Pure data movement -> one fused
    XLA broadcast-select pass."""
    Do, Ho, C, Wo = vals.shape
    dz = idx // (k * k)
    dy = (idx // k) % k
    dx = idx % k
    taps = jnp.arange(k, dtype=jnp.int32)

    def e(a):  # (Do,1,Ho,1,C,Wo,1)
        return a[:, None, :, None, :, :, None]

    sel = ((e(dz) == taps.reshape(1, k, 1, 1, 1, 1, 1)) &
           (e(dy) == taps.reshape(1, 1, 1, k, 1, 1, 1)) &
           (e(dx) == taps.reshape(1, 1, 1, 1, 1, 1, k)))
    out = jnp.where(sel, e(vals), jnp.zeros((), vals.dtype))
    out = out.reshape(Do * k, Ho * k, C, Wo * k)
    D, H, W = out_spatial
    if (Do * k, Ho * k, Wo * k) != (D, H, W):
        out = jnp.pad(out, ((0, D - Do * k), (0, H - Ho * k),
                            (0, 0), (0, W - Wo * k)))
    return out


# ---------------------------------------------------------------------------
# AutoEncoder forward
# ---------------------------------------------------------------------------
def forward_single(x_cdhw, p):
    # internal activation layout: (D, H, C, W); activations in bf16
    x = jnp.transpose(x_cdhw, (1, 2, 0, 3)).astype(jnp.bfloat16)

    # ---- encoder ----
    x = conv3d(x, *p["conv1"])
    up3 = (x.shape[0], x.shape[1], x.shape[3])
    x, i1 = maxpool3d_with_idx(x, 2)

    x = conv3d(x, *p["conv2"])
    up2 = (x.shape[0], x.shape[1], x.shape[3])
    x, i2 = maxpool3d_with_idx(x, 3)

    x = conv3d(x, *p["conv3"])
    up1 = (x.shape[0], x.shape[1], x.shape[3])
    x, i3 = maxpool3d_with_idx(x, 2)

    # conv4 (1x1x1, 96->1), pool4, fc1/fc2, unpool0 and deconv0 (1x1x1, 1->96)
    # are tiny -> plain jnp (kernel launch + DMA setup would dominate).
    w4, b4 = p["conv4"]
    x = jnp.einsum("dhcw,oc->dhow", x.astype(jnp.float32),
                   w4[:, :, 0, 0, 0]) + b4.reshape(1, 1, -1, 1)
    up0 = (x.shape[0], x.shape[1], x.shape[3])
    x, i4 = maxpool3d_jnp(x, 2)

    flat = x.reshape(1, 100)
    w1, b1 = p["fc1"]
    w2, b2 = p["fc2"]
    z = jax.nn.relu(flat @ w1.T + b1)
    h = jax.nn.relu(z @ w2.T + b2)
    x = h.reshape(1, 10, 1, 10)

    # ---- decoder ----
    x = maxunpool3d(x, i4, 2, up0)                     # (2, 20, 1, 20)
    wd0, bd0 = p["deconv0"]
    x = jnp.einsum("dhcw,co->dhow", x, wd0[:, :, 0, 0, 0]) + bd0.reshape(1, 1, -1, 1)
    x = x.astype(jnp.bfloat16)

    x = maxunpool3d(x, i3, 2, up1)
    x = conv_transpose3d(x, *p["deconv1"])
    x = maxunpool3d(x, i2, 3, up2)
    x = conv_transpose3d(x, *p["deconv2"])
    x = maxunpool3d(x, i1, 2, up3)
    x = conv_transpose3d(x, *p["deconv3"], out_dtype=jnp.float32)
    return jnp.transpose(x, (2, 0, 1, 3))              # back to (C=1, D, H, W)


def autoencoder_forward(x_ncdhw, params):
    # TODO(synk): for batch > 1, vmap forward_single (or fold batch into each
    # kernel's grid) instead of this Python loop; batch=1 here.
    outs = [forward_single(x_ncdhw[n], params) for n in range(x_ncdhw.shape[0])]
    return jnp.stack(outs)


# ---------------------------------------------------------------------------
# Deterministic parameter init (shapes from the module's __init__)
# ---------------------------------------------------------------------------
def _uniform(key, shape, scale):
    return jax.random.uniform(key, shape, jnp.float32, -scale, scale)


def init_params(key):
    ks = jax.random.split(key, 20)

    def conv(kw, kb, cout, cin, k):
        s = 1.0 / math.sqrt(cin * k ** 3)
        return (_uniform(kw, (cout, cin, k, k, k), s), _uniform(kb, (cout,), s))

    def deconv(kw, kb, cin, cout, k):
        s = 1.0 / math.sqrt(cout * k ** 3)
        return (_uniform(kw, (cin, cout, k, k, k), s), _uniform(kb, (cout,), s))

    def linear(kw, kb, fout, fin):
        s = 1.0 / math.sqrt(fin)
        return (_uniform(kw, (fout, fin), s), _uniform(kb, (fout,), s))

    return {
        "conv1":   conv(ks[0],  ks[1],  16, 1, 3),
        "conv2":   conv(ks[2],  ks[3],  32, 16, 3),
        "conv3":   conv(ks[4],  ks[5],  96, 32, 2),
        "conv4":   conv(ks[6],  ks[7],  1, 96, 1),
        "fc1":     linear(ks[8],  ks[9],  10, 100),
        "fc2":     linear(ks[10], ks[11], 100, 10),
        "deconv0": deconv(ks[12], ks[13], 1, 96, 1),
        "deconv1": deconv(ks[14], ks[15], 96, 32, 2),
        "deconv2": deconv(ks[16], ks[17], 32, 16, 3),
        "deconv3": deconv(ks[18], ks[19], 16, 1, 3),
    }


# ---------------------------------------------------------------------------
# Small self-checks of the Pallas kernels
# ---------------------------------------------------------------------------
def _ref_conv_valid(x, w, b):
    """Direct f32 reference for a stride-1 valid conv on (D, H, C, W)."""
    k = w.shape[2]
    Do, Ho, Wo = x.shape[0] - k + 1, x.shape[1] - k + 1, x.shape[3] - k + 1
    ref = jnp.zeros((Do, Ho, w.shape[0], Wo), jnp.float32) + b.reshape(1, 1, -1, 1)
    for kz in range(k):
        for ky in range(k):
            for kx in range(k):
                xs = x[kz:kz + Do, ky:ky + Ho, :, kx:kx + Wo]
                ref = ref + jnp.einsum("dhcw,oc->dhow", xs, w[:, :, kz, ky, kx])
    return ref


def _check_conv():
    ks = jax.random.split(jax.random.PRNGKey(42), 3)
    x = jax.random.normal(ks[0], (5, 12, 3, 17), jnp.float32)
    w = jax.random.normal(ks[1], (6, 3, 2, 2, 2), jnp.float32) * 0.2
    b = jax.random.normal(ks[2], (6,), jnp.float32)
    got = conv3d(x, w, b, out_dtype=jnp.float32)
    xb = x.astype(jnp.bfloat16).astype(jnp.float32)
    wb = w.astype(jnp.bfloat16).astype(jnp.float32)
    ref = _ref_conv_valid(xb, wb, b)
    err = float(jnp.max(jnp.abs(got - ref)))
    assert err < 2e-3, f"conv mismatch {err}"


def _check_conv_transpose():
    ks = jax.random.split(jax.random.PRNGKey(43), 3)
    x = jax.random.normal(ks[0], (4, 9, 16, 20), jnp.float32)
    w = jax.random.normal(ks[1], (16, 8, 3, 3, 3), jnp.float32) * 0.1
    b = jax.random.normal(ks[2], (8,), jnp.float32)
    got = conv_transpose3d(x, w, b, out_dtype=jnp.float32)
    xb = x.astype(jnp.bfloat16).astype(jnp.float32)
    wb = w.astype(jnp.bfloat16).astype(jnp.float32)
    xp = jnp.pad(xb, ((2, 2), (2, 2), (0, 0), (2, 2)))
    w_conv = jnp.transpose(jnp.flip(wb, axis=(2, 3, 4)), (1, 0, 2, 3, 4))
    ref = _ref_conv_valid(xp, w_conv, b)
    assert got.shape == ref.shape, (got.shape, ref.shape)
    err = float(jnp.max(jnp.abs(got - ref)))
    assert err < 2e-3, f"conv_transpose mismatch {err}"


def _check_pool():
    for k, shape in ((2, (4, 6, 16, 8)), (3, (6, 9, 16, 9))):
        x = jax.random.uniform(jax.random.PRNGKey(7 + k), shape, jnp.float32,
                               minval=0.1, maxval=1.0).astype(jnp.bfloat16)
        vals, idx = maxpool3d_with_idx(x, k)
        xw = _pool_windows(x, k).astype(jnp.float32)
        ref_vals = jnp.max(xw, axis=-1)
        assert jnp.array_equal(vals.astype(jnp.float32), ref_vals), "pool values"
        gathered = jnp.take_along_axis(xw, idx[..., None], axis=-1)[..., 0]
        assert jnp.array_equal(gathered, ref_vals), "pool indices"
        y = maxunpool3d(vals, idx, k, (shape[0], shape[1], shape[3]))
        v2, _ = maxpool3d_with_idx(y, k)
        assert jnp.array_equal(v2, vals), "pool/unpool round-trip"


if __name__ == "__main__":
    _check_conv()
    _check_conv_transpose()
    _check_pool()

    key = jax.random.PRNGKey(0)
    pkey, xkey = jax.random.split(key)
    params = init_params(pkey)

    # Smallest input consistent with the module's hard-coded x.view(-1, 10*10):
    # the conv/pool stack must reduce (D, H, W) to (1, 10, 10).
    D, H, W = 36, 252, 252
    x = jax.random.normal(xkey, (1, 1, D, H, W), jnp.float32)

    y = jax.jit(autoencoder_forward)(x, params)
    y = jax.block_until_ready(y)
    assert y.shape == (1, 1, D, H, W), y.shape
    print("KERNEL_OK")
</pallas_src>

<mosaic_0001>
module attributes {stable_mosaic.version = 11 : i64} {
  func.func @kernel(%arg0: i32, %arg1: memref<1x12x3x17xbf16, #tpu.memory_space<vmem>>, %arg2: memref<1x12x3x17xbf16, #tpu.memory_space<vmem>>, %arg3: memref<2x6x12xbf16, #tpu.memory_space<vmem>>, %arg4: memref<6x1xf32, #tpu.memory_space<vmem>>, %arg5: memref<1x11x6x16xf32, #tpu.memory_space<vmem>>, %arg6: memref<12x17xf32, #tpu.memory_space<vmem>>) attributes {dimension_semantics = [#tpu.dimension_semantics<parallel>], iteration_bounds = array<i64: 4>, scalar_prefetch = 0 : i64, scratch_operands = 1 : i64, tpu.core_type = #tpu.core_type<tc>, window_params = [{transform_indices = @transform_0, window_bounds = array<i64: 1, 12, 3, 17>}, {transform_indices = @transform_1, window_bounds = array<i64: 1, 12, 3, 17>}, {pipeline_mode = #tpu.pipeline_mode<synchronous>, transform_indices = @transform_2, window_bounds = array<i64: 2, 6, 12>}, {pipeline_mode = #tpu.pipeline_mode<synchronous>, transform_indices = @transform_3, window_bounds = array<i64: 6, 1>}, {transform_indices = @transform_4, window_bounds = array<i64: 1, 11, 6, 16>}]} {
    %c0 = arith.constant 0 : index
    %c0_0 = arith.constant 0 : index
    %0 = vector.load %arg4[%c0, %c0_0] : memref<6x1xf32, #tpu.memory_space<vmem>>, vector<6x1xf32>
    %1 = vector.shape_cast %0 : vector<6x1xf32> to vector<6x1xf32>
    %2 = vector.broadcast %1 : vector<6x1xf32> to vector<6x16xf32>
    %c0_i32 = arith.constant 0 : i32
    %c11_i32 = arith.constant 11 : i32
    %3 = arith.addi %c0_i32, %c11_i32 : i32
    %c1_i32 = arith.constant 1 : i32
    scf.for %arg7 = %c0_i32 to %3 step %c1_i32  : i32 {
      %c0_i32_2 = arith.constant 0 : i32
      %4 = arith.addi %arg7, %c0_i32_2 : i32
      %c0_3 = arith.constant 0 : index
      %5 = arith.index_cast %4 : i32 to index
      %c0_4 = arith.constant 0 : index
      %c0_5 = arith.constant 0 : index
      %6 = vector.load %arg1[%c0_3, %5, %c0_4, %c0_5] : memref<1x12x3x17xbf16, #tpu.memory_space<vmem>>, vector<1x1x3x17xbf16>
      %7 = vector.shape_cast %6 : vector<1x1x3x17xbf16> to vector<3x17xbf16>
      %8 = arith.extf %7 : vector<3x17xbf16> to vector<3x17xf32>
      %c0_6 = arith.constant 0 : index
      %c0_7 = arith.constant 0 : index
      %9 = vector.load %arg6[%c0_6, %c0_7] : memref<12x17xf32, #tpu.memory_space<vmem>>, vector<3x17xf32>
      tpu.vector_store %arg6[%c0_6, %c0_7], %8 {strides = array<i32>} : memref<12x17xf32, #tpu.memory_space<vmem>>, vector<3x17xf32>,
      %c1_i32_8 = arith.constant 1 : i32
      %10 = arith.addi %arg7, %c1_i32_8 : i32
      %c0_9 = arith.constant 0 : index
      %11 = arith.index_cast %10 : i32 to index
      %c0_10 = arith.constant 0 : index
      %c0_11 = arith.constant 0 : index
      %12 = vector.load %arg1[%c0_9, %11, %c0_10, %c0_11] : memref<1x12x3x17xbf16, #tpu.memory_space<vmem>>, vector<1x1x3x17xbf16>
      %13 = vector.shape_cast %12 : vector<1x1x3x17xbf16> to vector<3x17xbf16>
      %14 = arith.extf %13 : vector<3x17xbf16> to vector<3x17xf32>
      %c3 = arith.constant 3 : index
      %c0_12 = arith.constant 0 : index
      %15 = vector.load %arg6[%c3, %c0_12] : memref<12x17xf32, #tpu.memory_space<vmem>>, vector<3x17xf32>
      tpu.vector_store %arg6[%c3, %c0_12], %14 {strides = array<i32>} : memref<12x17xf32, #tpu.memory_space<vmem>>, vector<3x17xf32>,
      %c0_i32_13 = arith.constant 0 : i32
      %16 = arith.addi %arg7, %c0_i32_13 : i32
      %c0_14 = arith.constant 0 : index
      %17 = arith.index_cast %16 : i32 to index
      %c0_15 = arith.constant 0 : index
      %c0_16 = arith.constant 0 : index
      %18 = vector.load %arg2[%c0_14, %17, %c0_15, %c0_16] : memref<1x12x3x17xbf16, #tpu.memory_space<vmem>>, vector<1x1x3x17xbf16>
      %19 = vector.shape_cast %18 : vector<1x1x3x17xbf16> to vector<3x17xbf16>
      %20 = arith.extf %19 : vector<3x17xbf16> to vector<3x17xf32>
      %c6 = arith.constant 6 : index
      %c0_17 = arith.constant 0 : index
      %21 = vector.load %arg6[%c6, %c0_17] : memref<12x17xf32, #tpu.memory_space<vmem>>, vector<3x17xf32>
      tpu.vector_store %arg6[%c6, %c0_17], %20 {strides = array<i32>} : memref<12x17xf32, #tpu.memory_space<vmem>>, vector<3x17xf32>,
      %c1_i32_18 = arith.constant 1 : i32
      %22 = arith.addi %arg7, %c1_i32_18 : i32
      %c0_19 = arith.constant 0 : index
      %23 = arith.index_cast %22 : i32 to index
      %c0_20 = arith.constant 0 : index
      %c0_21 = arith.constant 0 : index
      %24 = vector.load %arg2[%c0_19, %23, %c0_20, %c0_21] : memref<1x12x3x17xbf16, #tpu.memory_space<vmem>>, vector<1x1x3x17xbf16>
      %25 = vector.shape_cast %24 : vector<1x1x3x17xbf16> to vector<3x17xbf16>
      %26 = arith.extf %25 : vector<3x17xbf16> to vector<3x17xf32>
      %c9 = arith.constant 9 : index
      %c0_22 = arith.constant 0 : index
      %27 = vector.load %arg6[%c9, %c0_22] : memref<12x17xf32, #tpu.memory_space<vmem>>, vector<3x17xf32>
      tpu.vector_store %arg6[%c9, %c0_22], %26 {strides = array<i32>} : memref<12x17xf32, #tpu.memory_space<vmem>>, vector<3x17xf32>,
      %c0_23 = arith.constant 0 : index
      %c0_24 = arith.constant 0 : index
      %c0_25 = arith.constant 0 : index
      %28 = vector.load %arg3[%c0_23, %c0_24, %c0_25] : memref<2x6x12xbf16, #tpu.memory_space<vmem>>, vector<1x6x12xbf16>
      %29 = vector.shape_cast %28 : vector<1x6x12xbf16> to vector<6x12xbf16>
      %c0_26 = arith.constant 0 : index
      %c0_27 = arith.constant 0 : index
      %30 = vector.load %arg6[%c0_26, %c0_27] : memref<12x17xf32, #tpu.memory_space<vmem>>, vector<12x16xf32>
      %31 = arith.truncf %30 : vector<12x16xf32> to vector<12x16xbf16>
      %cst = arith.constant dense<0.000000e+00> : vector<6x16xf32>
      %32 = tpu.matmul %29, %31, %cst {dimension_numbers = #tpu.dot_dimension_numbers<[1], [0], [0], [1], [0, 0, 1, 1], [], []>} : vector<6x12xbf16>, vector<12x16xbf16>, vector<6x16xf32> -> vector<6x16xf32>
      %33 = arith.addf %2, %32 : vector<6x16xf32>
      %c1 = arith.constant 1 : index
      %c0_28 = arith.constant 0 : index
      %c0_29 = arith.constant 0 : index
      %34 = vector.load %arg3[%c1, %c0_28, %c0_29] : memref<2x6x12xbf16, #tpu.memory_space<vmem>>, vector<1x6x12xbf16>
      %35 = vector.shape_cast %34 : vector<1x6x12xbf16> to vector<6x12xbf16>
      %c0_30 = arith.constant 0 : index
      %c1_31 = arith.constant 1 : index
      %36 = vector.load %arg6[%c0_30, %c1_31] : memref<12x17xf32, #tpu.memory_space<vmem>>, vector<12x16xf32>
      %37 = arith.truncf %36 : vector<12x16xf32> to vector<12x16xbf16>
      %cst_32 = arith.constant dense<0.000000e+00> : vector<6x16xf32>
      %38 = tpu.matmul %35, %37, %cst_32 {dimension_numbers = #tpu.dot_dimension_numbers<[1], [0], [0], [1], [0, 0, 1, 1], [], []>} : vector<6x12xbf16>, vector<12x16xbf16>, vector<6x16xf32> -> vector<6x16xf32>
      %39 = arith.addf %33, %38 : vector<6x16xf32>
      %c0_33 = arith.constant 0 : index
      %40 = arith.index_cast %arg7 : i32 to index
      %c0_34 = arith.constant 0 : index
      %c0_35 = arith.constant 0 : index
      %41 = vector.load %arg5[%c0_33, %40, %c0_34, %c0_35] : memref<1x11x6x16xf32, #tpu.memory_space<vmem>>, vector<1x1x6x16xf32>
      %42 = vector.shape_cast %41 : vector<1x1x6x16xf32> to vector<6x16xf32>
      %43 = vector.shape_cast %39 : vector<6x16xf32> to vector<1x1x6x16xf32>
      tpu.vector_store %arg5[%c0_33, %40, %c0_34, %c0_35], %43 {strides = array<i32>} : memref<1x11x6x16xf32, #tpu.memory_space<vmem>>, vector<1x1x6x16xf32>,
    }
    %c11_i32_1 = arith.constant 11 : i32
    return
  }
  func.func @transform_0(%arg0: i32) -> (i32, i32, i32, i32) {
    %c0_i32 = arith.constant 0 : i32
    %0 = arith.addi %arg0, %c0_i32 : i32
    %c0_i32_0 = arith.constant 0 : i32
    %c0_i32_1 = arith.constant 0 : i32
    %c0_i32_2 = arith.constant 0 : i32
    %c0_i32_3 = arith.constant 0 : i32
    return %0, %c0_i32_0, %c0_i32_1, %c0_i32_2 : i32, i32, i32, i32
  }
  func.func @transform_1(%arg0: i32) -> (i32, i32, i32, i32) {
    %c1_i32 = arith.constant 1 : i32
    %0 = arith.addi %arg0, %c1_i32 : i32
    %c0_i32 = arith.constant 0 : i32
    %c0_i32_0 = arith.constant 0 : i32
    %c0_i32_1 = arith.constant 0 : i32
    %c0_i32_2 = arith.constant 0 : i32
    return %0, %c0_i32, %c0_i32_0, %c0_i32_1 : i32, i32, i32, i32
  }
  func.func @transform_2(%arg0: i32) -> (i32, i32, i32) {
    %c0_i32 = arith.constant 0 : i32
    %c0_i32_0 = arith.constant 0 : i32
    %c0_i32_1 = arith.constant 0 : i32
    %c0_i32_2 = arith.constant 0 : i32
    return %c0_i32, %c0_i32_0, %c0_i32_1 : i32, i32, i32
  }
  func.func @transform_3(%arg0: i32) -> (i32, i32) {
    %c0_i32 = arith.constant 0 : i32
    %c0_i32_0 = arith.constant 0 : i32
    %c0_i32_1 = arith.constant 0 : i32
    return %c0_i32, %c0_i32_0 : i32, i32
  }
  func.func @transform_4(%arg0: i32) -> (i32, i32, i32, i32) {
    %c0_i32 = arith.constant 0 : i32
    %c0_i32_0 = arith.constant 0 : i32
    %c0_i32_1 = arith.constant 0 : i32
    %c0_i32_2 = arith.constant 0 : i32
    return %arg0, %c0_i32, %c0_i32_0, %c0_i32_1 : i32, i32, i32, i32
  }
}

</mosaic_0001>

<bundles_post_ra>
// kernel: tpu_custom_call.1
= control target key start
LH: loop header
LB: loop body
LE: loop exit
PB: predicated region body
PF: predicated region fallthrough
CT: control target
= control target key end

     0   :  { %9 = vsyncpa [#allocation4], 0  ;;  %s1055_s0 = inlined_call_operand.hbm [shape: bf16[5,12,3,17], index: 0, kind: input, shape index: {}]   ;;  %s1056_s1 = inlined_call_operand.hbm [shape: bf16[5,12,3,17], index: 1, kind: input, shape index: {}]   ;;  %s1057_s2 = inlined_call_operand.vmem [shape: bf16[2,6,12], index: 2, kind: input, shape index: {}]   ;;  %s1058_s3 = inlined_call_operand.vmem [shape: f32[6,1], index: 3, kind: input, shape index: {}]   ;;  %s1059_s4 = inlined_call_operand.vmem [shape: f32[4,11,6,16], index: 4, kind: output, shape index: {}]  }
   0x1   :  { %11 = vsyncpa [#allocation4 + $0x1], 0 }
   0x2   :  { %12 = vsyncpa [#allocation6], 0 }
   0x3   :  { %14 = vsyncpa [#allocation6 + $0x1], 0  ;;  %s805_s15 = smov 0   ;;  %s807_s16 = smov 0  }
   0x4   :  { %s809_s17 = smov 0   ;;  %s811_s18 = smov 0  }
   0x5   :  { %s813_s19 = smov 0   ;;  %s815_s20 = smov 0  }
   0x6   :  { %s817_s21 = smov 0  }
   0x7 LB: > { %s839_s22 = sadd.s32 4294967295, %s766_s21   ;;  %s842_s23 = sadd.s32 1, %s766_s21   ;;  %s766_s21 = sphi %s817_s21, %s1084_s21   ;;  %s762_s20 = sphi %s815_s20, %s1083_s20   ;;  %s758_s19 = sphi %s813_s19, %s1082_s19   ;;  %s754_s18 = sphi %s811_s18, %s1081_s18   ;;  %s750_s17 = sphi %s809_s17, %s1080_s17   ;;  %s746_s16 = sphi %s807_s16, %s1079_s16   ;;  %s742_s15 = sphi %s805_s15, %s1078_s15  }
   0x8   : > { %s24_s24 = ssub.s32 %s766_s21, %s842_s23  ;;  %s27_s25 = sadd.s32 1, %s762_s20 }
   0x9   : > { %p25_p0 = scmp.eq.s32.totalorder %s24_s24, 0  ;;  %p34_p1 = scmp.ne.s32.totalorder %s762_s20, %s758_s19 }
   0xa   : > { %p1062_p2 = scmp.eq.s32.totalorder %s766_s21, 0  ;;  %p40_p3 = scmp.ne.s32.totalorder %s758_s19, %s754_s18 }
   0xb   : > { %s852_s26 = scalar_select %p25_p0, %s762_s20, %s27_s25  }
   0xc   : > { %p36_p4 = por %p1062_p2, %p34_p1  ;;  %p1061_p5 = scmp.eq.s32.totalorder %s839_s22, 0 }
   0xd   : > { %p1060_p6 = scmp.lt.s32.totalorder %s766_s21, 4  ;;  %s166_s28 = sand.u32 1, %s762_s20  }
   0xe   : > { %p860_p7 = por %p1061_p5, %p40_p3  ;;  %s550_s29 = smul.u32 24, %s166_s28 }
   0xf   : > { %s551_s30 = smul.u32 384, %s766_s21  ;;  %p868_p8 = pnand %p1060_p6, %p36_p4 }
  0x10   : > { %s1066_s27 = scalar_select %p860_p7, 1, 0 }
  0x11   : > { %s877_s8 = scalar_lea.hbm %s1055_s0, %s551_s30  ;;  %s170_s9 = scalar_lea.vmem [#allocation3], %s550_s29 }
  0x12   : > { %s177_s10 = sshll.u32 %s170_s9, 4  ;;  %s882_s11 = scalar_lea.sflag [#allocation4], %s166_s28  ;;  %s879_s10 = int_to_ptr.vmem [resolvable:$true] %s177_s10 }
  0x13   : > { %s639_s12 = scalar_lea.hbm %s877_s8, 384  ;;  %p641_p11 = pneg %p868_p8 }
  0x14   : > { %p640_p10 = scmp.ne.s32.totalorder %s877_s8, %s639_s12  ;;  %s644_s18 = scalar_lea.hbm %s1055_s0, 1920 }
  0x15   : > { %p645_p0 = scmp.lt.u32.totalorder %s877_s8, %s1055_s0  ;;  %p646_p1 = scmp.lt.u32.totalorder %s644_s18, %s639_s12 }
  0x16   : > { %p642_p12 = pnand %p641_p11, %p640_p10  ;;  %p648_p4 = scmp.lt.u32.totalorder %s639_s12, %s877_s8 }
  0x17   : > { %p647_p3 = por %p646_p1, %p645_p0 }
  0x18   : > { %p643_p13 = pneg %p642_p12 }
  0x19   : > { %p649_p6 = por %p648_p4, %p647_p3 }
  0x1b   : > { %p650_p5 = pnand %p649_p6, %p643_p13 }
  0x1d   : > { %653 = shalt.err (!%p650_p5)
}
  0x1e   : > { %s654_s28 = scalar_lea.vmem %s879_s10, 384  ;;  %s772_s29 = smov [#allocation3]  }
  0x1f   : > { %p655_p10 = scmp.ne.s32.totalorder %s879_s10, %s654_s28  ;;  %s659_s6 = sshll.u32 %s772_s29, 4  ;;  %s660_s6 = int_to_ptr.vmem [resolvable:$false] %s659_s6 }
  0x20   : > { %s661_s7 = scalar_lea.vmem %s660_s6, 768  ;;  %p662_p9 = scmp.lt.s32.totalorder %s879_s10, %s660_s6 }
  0x21   : > { %p657_p12 = pnand %p655_p10, %p641_p11  ;;  %p663_p0 = scmp.lt.s32.totalorder %s661_s7, %s654_s28 }
  0x23   : > { %p658_p2 = pneg %p657_p12  ;;  %p664_p1 = por %p663_p0, %p662_p9 }
  0x25   : > { %p665_p3 = pnand %p664_p1, %p658_p2 }
  0x27   : > { %668 = shalt.err (!%p665_p3)
}
  0x28   : > { %s1063_s9 = smov 32   ;;  %s774_s12 = smov 2  }
  0x29   : > { %563 = dma.hbm_to_vmem [thread:$0]  (!%p868_p8), %s877_s8, 384, %s879_s10, %s882_s11, %s1063_s9, %s1063_s9, %s774_s12  }
  0x2a   : > { %p207_p2 = scmp.lt.s32.totalorder %s766_s21, 5  ;;  %p1068_p5 = scmp.ge.s32.totalorder %s766_s21, 1 }
  0x2b   : > { %s51_s14 = sadd.s32 1, %s842_s23  ;;  %s55_s18 = sadd.s32 1, %s750_s17 }
  0x2c   : > { %p916_p6 = pnand %p1068_p5, %p207_p2  ;;  %s52_s24 = ssub.s32 %s842_s23, %s51_s14 }
  0x2d   : > { %p62_p9 = scmp.ne.s32.totalorder %s750_s17, %s746_s16  ;;  %p53_p11 = scmp.eq.s32.totalorder %s52_s24, 0 }
  0x2e   : > { %p68_p13 = scmp.ne.s32.totalorder %s746_s16, %s742_s15  ;;  %p1070_p4 = scmp.eq.s32.totalorder %s766_s21, 0 }
  0x2f   : > { %s187_s5 = sand.u32 1, %s750_s17   ;;  %p1071_p12 = scmp.eq.s32.totalorder %s839_s22, 0 }
  0x30   : > { %p64_p10 = por %p62_p9, %p1070_p4  ;;  %s552_s10 = smul.u32 24, %s187_s5 }
  0x31   : > { %s931_s25 = scalar_select %p53_p11, %s750_s17, %s55_s18  }
  0x32   : > { %p935_p0 = por %p68_p13, %p1071_p12  ;;  %s442_s29 = scalar_lea.hbm %s1056_s1, %s551_s30 }
  0x33   : > { %p1073_p8 = scmp.lt.s32.totalorder %s766_s21, 4  ;;  %s950_s15 = scalar_lea.hbm %s442_s29, 384 }
  0x34   : > { %s1072_s8 = scalar_select %p935_p0, 1, 0 }
  0x35   : > { %p946_p1 = pnand %p1073_p8, %p64_p10  ;;  %s191_s7 = scalar_lea.vmem [#allocation5], %s552_s10 }
  0x36   : > { %s199_s14 = sshll.u32 %s191_s7, 4  ;;  %s954_s18 = scalar_lea.sflag [#allocation6], %s187_s5  ;;  %s952_s14 = int_to_ptr.vmem [resolvable:$true] %s199_s14 }
  0x37   : > { %s699_s24 = scalar_lea.hbm %s442_s29, 768  ;;  %p671_p2 = pneg %p946_p1 }
  0x38   : > { %p670_p3 = scmp.ne.s32.totalorder %s950_s15, %s699_s24  ;;  %s674_s11 = scalar_lea.hbm %s1056_s1, 1920 }
  0x39   : > { %p675_p11 = scmp.lt.u32.totalorder %s950_s15, %s1056_s1  ;;  %p676_p13 = scmp.lt.u32.totalorder %s674_s11, %s699_s24 }
  0x3a   : > { %p672_p5 = pnand %p671_p2, %p670_p3  ;;  %p678_p10 = scmp.lt.u32.totalorder %s699_s24, %s950_s15 }
  0x3b   : > { %p677_p4 = por %p676_p13, %p675_p11 }
  0x3c   : > { %p673_p9 = pneg %p672_p5 }
  0x3d   : > { %p679_p12 = por %p678_p10, %p677_p4 }
  0x3f   : > { %p680_p8 = pnand %p679_p12, %p673_p9 }
  0x41   : > { %683 = shalt.err (!%p680_p8)
}
  0x42   : > { %s684_s5 = scalar_lea.vmem %s952_s14, 384  ;;  %s775_s10 = smov [#allocation5]  }
  0x43   : > { %p685_p3 = scmp.ne.s32.totalorder %s952_s14, %s684_s5  ;;  %s689_s29 = sshll.u32 %s775_s10, 4  ;;  %s690_s29 = int_to_ptr.vmem [resolvable:$false] %s689_s29 }
  0x44   : > { %s691_s9 = scalar_lea.vmem %s690_s29, 768  ;;  %p692_p7 = scmp.lt.s32.totalorder %s952_s14, %s690_s29 }
  0x45   : > { %p687_p5 = pnand %p685_p3, %p671_p2  ;;  %p693_p11 = scmp.lt.s32.totalorder %s691_s9, %s684_s5 }
  0x47   : > { %p688_p0 = pneg %p687_p5  ;;  %p694_p13 = por %p693_p11, %p692_p7 }
  0x49   : > { %p695_p4 = pnand %p694_p13, %p688_p0 }
  0x4b   : > { %698 = shalt.err (!%p695_p4)
}
  0x4c   : > { %s1075_s7 = smov 32   ;;  %211 = sbr.rel (%p916_p6) target bundleno = 569 (0x239), region = 36 }
  0x4d   : > { %566 = dma.hbm_to_vmem [thread:$0]  (!%p946_p1), %s950_s15, 384, %s952_s14, %s954_s18, %s1075_s7, %s1075_s7, %s774_s12  }
  0x4e   : > { %s213_s24 = sand.u32 (!%p916_p6), 1, %s758_s19   ;;  %p1076_p7 = scmp.ne.s32.totalorder (!%p916_p6), %s1066_s27, 0 }
  0x4f   : > { %s987_s21 = smul.u32 (!%p916_p6), 24, %s213_s24  ;;  %s214_s30 = scalar_lea.sflag (!%p916_p6), [#allocation4], %s213_s24 }
  0x51   : > { %s217_s11 = scalar_lea.vmem (!%p916_p6), [#allocation3], %s987_s21 }
  0x53   : > { %733 = dma.done.wait (%p1076_p7), %s214_s30, 384  }
  0x54   : > { %735 = vsyncadd (%p1076_p7), %s214_s30, 4294966912  ;;  %s222_s6 = sand.u32 1, %s746_s16   ;;  %p1077_p6 = scmp.ne.s32.totalorder %s1072_s8, 0 }
  0x55   : > { %s995_s12 = smul.u32 24, %s222_s6  ;;  %s223_s13 = scalar_lea.sflag [#allocation6], %s222_s6 }
  0x57   : > { %s226_s15 = scalar_lea.vmem [#allocation5], %s995_s12 }
  0x58   : > { %737 = dma.done.wait (%p1077_p6), %s223_s13, 384  }
  0x59   : > { %739 = vsyncadd (%p1077_p6), %s223_s13, 4294966912  ;;  %v776_v0 = vmov 0   ;;  %p257_p0 = scmp.lt.s32.totalorder %s839_s22, 3  ;;  %v263_v1 = vld [vmem:[%s1058_s3] sm:$0x3f]  ;;  %s1012_s8 = smov 0  }
  0x5a   : > { %638 = vset.pattern.permute.xlu0 %v776_v0 }
  0x5b   : > { %s1086_s22 = smov (!%p257_p0, %s839_s22), 3  ;;  %266 = vperm.xlu0 %638, %v263_v1  }
  0x5c   : > { %s555_s27 = smul.u32 88, %s1086_s22 }
  0x5e   : > { %s1010_s10 = scalar_lea.vmem %s1059_s4, %s555_s27 }
  0xda   : > { %v267_v2 = vpop.permute.xlu0 %266 }
  0xdb LB: >> { %v777_v3 = vmov 0.0   ;;  %vm778_vm0 = vmmov 0   ;;  %s520_s22 = sshll.u32 %s770_s8, 1  ;;  %vm279_vm1 = vcmask 133120   ;;  %vm305_vm2 = vcmask 1045504   ;;  %s779_s7 = smov 127   ;;  %s770_s8 = sphi %s1012_s8, %s274_s8  }
  0xdc   : >> { %536 = vmatprep.subr.bf16.mxu1 %v777_v3  ;;  %538 = vmatprep.mubr.msk.bf16.mxu1 %vm778_vm0, %v777_v3  ;;  %s276_s29 = scalar_lea.vmem %s217_s11, %s520_s22 [#allocation3]  ;;  %s288_s9 = scalar_lea.vmem %s226_s15, %s520_s22 [#allocation5]  ;;  %v297_v16 = vld [vmem:[%s1057_s2] sm:$0x7]  ;;  %vm301_vm3 = vcmask 97280   ;;  %v527_v19 = vld [vmem:[%s1057_s2 + $0x4] sm:$0x7]  ;;  %vm404_vm4 = vcmask 128000  }
  0xdd   : >> { %542 = vmatprep.subr.bf16.mxu0 %v777_v3  ;;  %544 = vmatprep.mubr.msk.bf16.mxu0 %vm778_vm0, %v777_v3  ;;  %v277_v4 = vld [vmem:[%s276_s29] sm:$0x3]  ;;  %v522_v5 = vld [vmem:[%s276_s29 + $0x2] sm:$0x3]  ;;  %s529_s27 = sshll.u32 %s770_s8, 3  ;;  %s274_s8 = sadd.s32 1, %s770_s8  }
  0xde   : >> { %v289_v6 = vld [vmem:[%s288_s9] sm:$0x3]  ;;  %v278_v7 = vunpack.c.l.bf16 %v277_v4  ;;  %v285_v8 = vunpack.c.l.bf16 %v522_v5  ;;  %v525_v10 = vld [vmem:[%s288_s9 + $0x2] sm:$0x3]  ;;  %s403_s14 = scalar_lea.vmem %s1010_s10, %s529_s27  ;;  %p271_p1 = scmp.ge.s32.totalorder %s274_s8, 11  }
  0xdf   : >> { %v290_v9 = vunpack.c.l.bf16 %v289_v6  ;;  %v295_v11 = vunpack.c.l.bf16 %v525_v10 }
  0xe0   : >> { %280 = vst.msk [vmem:[#allocation2] sm:$0x7] %vm279_vm1, %v278_v7  ;;  %286 = vst.msk [vmem:[#allocation2 + $0x3] sm:$0x7] %vm279_vm1, %v285_v8 }
  0xe1   : >> { %291 = vst.msk [vmem:[#allocation2 + $0x6] sm:$0x7] %vm279_vm1, %v290_v9  ;;  %296 = vst.msk [vmem:[#allocation2 + $0x9] sm:$0x7] %vm279_vm1, %v295_v11 }
  0xe8   : >> { %v298_v12 = vld [vmem:[#allocation2] sm:$0xff]  ;;  %v299_v13 = vld [vmem:[#allocation2 + $0x8] sm:$0xf] }
  0xe9   : >> { %v300_v14 = vpack.c.bf16 %v299_v13, %v298_v12 }
  0xeb   : >> { %353 = vrot.lane.b32.xlu0 %v300_v14, %s779_s7  ;;  %v307_v15 = vsel %vm305_vm2, %v300_v14, 0 }
  0xec   : >> { %537 = vmatpush3.bf16.msra.mxu1 %v307_v15 }
  0xef   : >> { %539 = vmatmul.mubr.msk.bf16.vlgmr.msra.gmra.mrb[0].mxu1 %vm301_vm3, %v297_v16 }
 0x15d   : >> { %v354_v17 = vpop.permute.xlu0 %353 }
 0x15e   : >> { %v359_v18 = vsel %vm305_vm2, %v354_v17, 0 }
 0x15f   : >> { %543 = vmatpush3.bf16.msra.mxu0 %v359_v18 }
 0x162   : >> { %545 = vmatmul.mubr.msk.bf16.vlgmr.msra.gmra.mrb[0].mxu0 %vm301_vm3, %v527_v19 }
 0x1c2   : >> { %v343_v20 = vpop.f32.mrb[0].mxu1 }
 0x1c3   : >> { %v540_v21 = vpop.f32.mrb[1].mxu1  ;;  %v349_v24 = vadd.f32 %v343_v20, %v267_v2 }
 0x1c4   : >> { %v346_v22 = vpop.f32.mrb[2].mxu1 }
 0x1c5   : >> { %v541_v23 = vpop.f32.mrb[3].mxu1 }
 0x232   : > { %273 = sbr.rel (!%p271_p1) target bundleno = 219 (0xdb), region = 102 }
 0x235   : >> { %v395_v25 = vpop.f32.mrb[0].mxu0 }
 0x236   : >> { %v401_v26 = vadd.f32 %v395_v25, %v349_v24  ;;  %v546_v27 = vpop.f32.mrb[1].mxu0 }
 0x237   : >> { %v398_v28 = vpop.f32.mrb[2].mxu0 }
 0x238   : >> { %405 = vst.msk [vmem:[%s403_s14] sm:$0x3f] %vm404_vm4, %v401_v26  ;;  %v547_v29 = vpop.f32.mrb[3].mxu0 }
 0x239 PF: > { %p17_p2 = scmp.ge.s32.totalorder %s842_s23, 6   ;;  %s1078_s15 = smov %s746_s16 }
 0x23a   : > { %s1079_s16 = smov %s750_s17  ;;  %s1080_s17 = smov %s931_s25 }
 0x23b   : > { %s1081_s18 = smov %s758_s19  ;;  %s1082_s19 = smov %s762_s20 }
 0x23c   : > { %s1083_s20 = smov %s852_s26  ;;  %s1084_s21 = smov %s842_s23 }
 0x23d   :  { %19 = sbr.rel (!%p17_p2) target bundleno = 7 (0x7), region = 113 }
 0x244   :  { %427 = vsyncpa [#allocation4], 1 }
 0x245   :  { %429 = vsyncpa [#allocation4 + $0x1], 1 }
 0x246   :  { %430 = vsyncpa [#allocation6], 1 }
 0x247   :  { %432 = vsyncpa [#allocation6 + $0x1], 1 }

</bundles_post_ra>
